<compile_context>
chip_gen: v7x
topology: tpu7x:2x2x1
jax: 0.10.0
libtpu: 0.0.40
codegen_flags: <defaults>
</compile_context>

<pallas_src>
import functools

import jax
import jax.numpy as jnp
from jax.experimental import pallas as pl
from jax.experimental.pallas import tpu as pltpu


_NEG_BIG = -1e30  # bias padding value; exp(-1e30 - m) underflows to exactly 0 in f32


def _round_up(x, m):
    return (x + m - 1) // m * m


def attn_decoder_kernel(tok_ref,        # SMEM (1,) int32 (scalar prefetch, unused in body)
                        emb_ref,        # (1, 1, H) bf16 : selected embedding row
                        attn_w_ref,     # (2H, MP) bf16
                        attn_b_ref,     # (1, MP) f32  (pad lanes = -1e30)
                        comb_w_ref,     # (2H, H) bf16
                        comb_b_ref,     # (1, H) f32
                        gru_w_ref,      # (L, 2H, 4H) bf16 fused [rz | n_in | n_hid]
                        gru_b_ref,      # (L, 4H) f32
                        out_w_ref,      # (H, VP) bf16
                        out_b_ref,      # (1, VP) f32  (pad lanes = -1e30)
                        hidden_ref,     # (L, H) f32
                        enc_ref,        # (MP, H) f32  (zero-padded rows)
                        logp_ref,       # out: (1, VP) f32
                        aw_ref,         # out: (1, MP) f32
                        newh_ref,       # out: (L, H) f32 (aliased with hidden input)
                        *, hidden_size, num_layers):
    del tok_ref  # token already consumed by the embedding BlockSpec index_map
    H = hidden_size

    # embedding(_input).view(1,1,-1); dropout is identity in eval mode
    # TODO(synk): dropout omitted (inference semantics); p does not affect the eval forward
    embedded = emb_ref[0].astype(jnp.float32)                       # (1, H)
    h0 = hidden_ref[pl.ds(0, 1), :]                                 # (1, H)

    # attn(cat(embedded, hidden[0])) -> softmax : one fused (1,2H)@(2H,MP) bf16 matmul
    qa = jnp.concatenate([embedded, h0], axis=-1).astype(jnp.bfloat16)
    attn_logits = (jnp.dot(qa, attn_w_ref[...], preferred_element_type=jnp.float32)
                   + attn_b_ref[...])                               # (1, MP); pads ~ -1e30
    m = jnp.max(attn_logits, axis=-1, keepdims=True)
    e = jnp.exp(attn_logits - m)                                    # pads -> exactly 0
    aw = e * pl.reciprocal(jnp.sum(e, axis=-1, keepdims=True), approx=True)
    aw_ref[...] = aw

    # attn_applied = bmm(attn_weights, encoder_outputs): (1,MP)@(MP,H); padded rows x 0
    attn_applied = jnp.dot(aw, enc_ref[...], preferred_element_type=jnp.float32)

    # attn_combine(cat(embedded, attn_applied)) + ReLU : one fused (1,2H)@(2H,H) matmul
    qc = jnp.concatenate([embedded, attn_applied], axis=-1).astype(jnp.bfloat16)
    x = (jnp.dot(qc, comb_w_ref[...], preferred_element_type=jnp.float32)
         + comb_b_ref[...])
    x = jnp.maximum(x, 0.0)                                         # (1, H) f32

    # multi-layer GRU (seq=1, batch=1); PyTorch gate order (r, z, n).
    # One (1,2H)@(2H,4H) matmul per layer: g = [rz_sum (2H) | gi_n (H) | gh_n (H)].
    for l in range(num_layers):
        h_prev = hidden_ref[pl.ds(l, 1), :]                         # (1, H) f32
        lhs = jnp.concatenate([x, h_prev], axis=-1).astype(jnp.bfloat16)     # (1, 2H)
        g = (jnp.dot(lhs, gru_w_ref[l], preferred_element_type=jnp.float32)
             + gru_b_ref[pl.ds(l, 1), :])                           # (1, 4H) f32
        rz = jax.nn.sigmoid(g[:, 0:2 * H])                          # fused r,z sigmoid
        r = rz[:, 0:H]
        z = rz[:, H:2 * H]
        n = jnp.tanh(g[:, 2 * H:3 * H] + r * g[:, 3 * H:4 * H])
        h_new = (1.0 - z) * n + z * h_prev
        newh_ref[pl.ds(l, 1), :] = h_new
        x = h_new

    # out(output[0]) + log_softmax; padded logits carry -1e30 bias -> exp == 0
    logits = (jnp.dot(x.astype(jnp.bfloat16), out_w_ref[...],
                      preferred_element_type=jnp.float32)
              + out_b_ref[...])                                     # (1, VP)
    lm = jnp.max(logits, axis=-1, keepdims=True)
    shifted = logits - lm
    lse = jnp.log(jnp.sum(jnp.exp(shifted), axis=-1, keepdims=True))
    logp_ref[...] = shifted - lse


def attn_decoder_forward(tok, hidden, encoder_outputs, kparams,
                         *, hidden_size, num_layers, output_size, max_length):
    """tok: (1,) int; hidden: (L, 1, H) f32; encoder_outputs: (max_length, H) f32."""
    H, L, V, M = hidden_size, num_layers, output_size, max_length
    MP = _round_up(max(M, 128), 128)
    VP = _round_up(max(V, 128), 128)

    tok = jnp.clip(tok.astype(jnp.int32), 0, V - 1)        # guard the embedding-row DMA
    hidden2d = hidden.reshape(L, H).astype(jnp.float32)
    enc = jnp.zeros((MP, H), jnp.float32).at[:M, :].set(encoder_outputs.astype(jnp.float32))

    kernel = functools.partial(attn_decoder_kernel, hidden_size=H, num_layers=L)
    vmem = pl.BlockSpec(memory_space=pltpu.MemorySpace.VMEM)

    flops = 2 * (2 * H * MP + MP * H + 2 * H * H + L * 2 * H * 4 * H + H * VP)
    transcendentals = MP + VP + L * 3 * H + 1
    bytes_accessed = (2 * H                                           # 1 embedding row (bf16)
                      + 2 * (2 * H * MP + 2 * H * H + L * 2 * H * 4 * H + H * VP)  # bf16 W
                      + 4 * (MP + H + L * 4 * H + VP)                 # f32 biases
                      + 4 * (L * H + MP * H)                          # hidden + padded enc
                      + 4 * (VP + MP + L * H))                        # outputs

    grid_spec = pltpu.PrefetchScalarGridSpec(
        num_scalar_prefetch=1,
        grid=(1,),
        in_specs=[
            # only the selected embedding row is copied HBM -> VMEM
            pl.BlockSpec((1, 1, H), lambda i, tok_ref: (tok_ref[0], 0, 0)),
            vmem, vmem,     # attn_w, attn_b
            vmem, vmem,     # comb_w, comb_b
            vmem, vmem,     # gru_w, gru_b
            vmem, vmem,     # out_w, out_b
            vmem,           # hidden
            vmem,           # encoder_outputs (padded)
        ],
        out_specs=(vmem, vmem, vmem),
    )

    logp_pad, aw_pad, newh = pl.pallas_call(
        kernel,
        grid_spec=grid_spec,
        out_shape=(jax.ShapeDtypeStruct((1, VP), jnp.float32),
                   jax.ShapeDtypeStruct((1, MP), jnp.float32),
                   jax.ShapeDtypeStruct((L, H), jnp.float32)),
        # flat input order: tok(0) emb(1) attn_w(2) attn_b(3) comb_w(4) comb_b(5)
        #                   gru_w(6) gru_b(7) out_w(8) out_b(9) hidden(10) enc(11)
        input_output_aliases={10: 2},          # hidden buffer is donated to new hidden
        compiler_params=pltpu.CompilerParams(
            dimension_semantics=("arbitrary",),
            vmem_limit_bytes=32 * 1024 * 1024),
        cost_estimate=pl.CostEstimate(flops=flops,
                                      transcendentals=transcendentals,
                                      bytes_accessed=bytes_accessed),
    )(tok,
      kparams["embedding"], kparams["attn_w"], kparams["attn_b"],
      kparams["comb_w"], kparams["comb_b"],
      kparams["gru_w"], kparams["gru_b"],
      kparams["out_w"], kparams["out_b"],
      hidden2d, enc)

    return logp_pad[:, :V], newh.reshape(L, 1, H), aw_pad[:, :M]


def init_params(key, *, output_size, num_layers, hidden_size, max_length):
    """PyTorch-layout f32 parameters (weights are (out_features, in_features))."""
    H, L, V, M = hidden_size, num_layers, output_size, max_length
    ks = list(jax.random.split(key, 12))

    def unif(k, shape, fan_in):
        bound = 1.0 / jnp.sqrt(jnp.asarray(fan_in, jnp.float32))
        return jax.random.uniform(k, shape, jnp.float32, -bound, bound)

    return {
        "embedding": jax.random.normal(ks[0], (V, H), jnp.float32),
        "attn_w": unif(ks[1], (M, 2 * H), 2 * H),
        "attn_b": unif(ks[2], (M,), 2 * H),
        "comb_w": unif(ks[3], (H, 2 * H), 2 * H),
        "comb_b": unif(ks[4], (H,), 2 * H),
        "w_ih": unif(ks[5], (L, 3 * H, H), H),      # gate order r, z, n
        "w_hh": unif(ks[6], (L, 3 * H, H), H),
        "b_ih": unif(ks[7], (L, 3 * H), H),
        "b_hh": unif(ks[8], (L, 3 * H), H),
        "out_w": unif(ks[9], (V, H), H),
        "out_b": unif(ks[10], (V,), H),
    }


def pack_params(p, *, hidden_size, num_layers, output_size, max_length):
    """Re-layout PyTorch-style f32 params into the kernel's fused/padded/bf16 layout."""
    H, L, V, M = hidden_size, num_layers, output_size, max_length
    MP = _round_up(max(M, 128), 128)
    VP = _round_up(max(V, 128), 128)

    def pad_cols(w, width, fill=0.0):
        out = jnp.full((w.shape[0], width), fill, jnp.float32)
        return out.at[:, :w.shape[1]].set(w)

    attn_w = pad_cols(p["attn_w"].T, MP)                       # (2H, MP)
    attn_b = pad_cols(p["attn_b"][None, :], MP, _NEG_BIG)      # (1, MP)
    out_w = pad_cols(p["out_w"].T, VP)                         # (H, VP)
    out_b = pad_cols(p["out_b"][None, :], VP, _NEG_BIG)        # (1, VP)

    # fused GRU block matrix: [x | h] @ [[Wih_rz, Wih_n, 0 ], [Whh_rz, 0, Whh_n]]
    gru_w, gru_b = [], []
    for l in range(L):
        wih = p["w_ih"][l].T                                   # (H, 3H)
        whh = p["w_hh"][l].T                                   # (H, 3H)
        zeros = jnp.zeros((H, H), jnp.float32)
        top = jnp.concatenate([wih[:, :2 * H], wih[:, 2 * H:], zeros], axis=1)
        bot = jnp.concatenate([whh[:, :2 * H], zeros, whh[:, 2 * H:]], axis=1)
        gru_w.append(jnp.concatenate([top, bot], axis=0))      # (2H, 4H)
        gru_b.append(jnp.concatenate([p["b_ih"][l, :2 * H] + p["b_hh"][l, :2 * H],
                                      p["b_ih"][l, 2 * H:], p["b_hh"][l, 2 * H:]]))

    return {
        "embedding": p["embedding"].astype(jnp.bfloat16).reshape(V, 1, H),
        "attn_w": attn_w.astype(jnp.bfloat16),
        "attn_b": attn_b,
        "comb_w": p["comb_w"].T.astype(jnp.bfloat16),          # (2H, H)
        "comb_b": p["comb_b"][None, :].astype(jnp.float32),    # (1, H)
        "gru_w": jnp.stack(gru_w).astype(jnp.bfloat16),        # (L, 2H, 4H)
        "gru_b": jnp.stack(gru_b).astype(jnp.float32),         # (L, 4H)
        "out_w": out_w.astype(jnp.bfloat16),
        "out_b": out_b,
    }


def reference_forward(tok, hidden, enc, p, *, hidden_size, num_layers):
    """Pure-JAX mirror of the PyTorch forward (eval mode).

    Matmul weights are rounded through bf16 (same storage as the kernel), so the
    comparison isolates kernel-side activation rounding / approx reciprocal.
    """
    H, L = hidden_size, num_layers
    rb = lambda w: w.astype(jnp.bfloat16).astype(jnp.float32)
    emb = rb(p["embedding"])[tok[0]][None, :]
    attn_logits = (jnp.concatenate([emb, hidden[0]], axis=1) @ rb(p["attn_w"]).T
                   + p["attn_b"][None, :])
    aw = jax.nn.softmax(attn_logits, axis=1)
    applied = aw @ enc
    x = jax.nn.relu(jnp.concatenate([emb, applied], axis=1) @ rb(p["comb_w"]).T
                    + p["comb_b"][None, :])
    newh = []
    for l in range(L):
        hp = hidden[l]
        gi = x @ rb(p["w_ih"][l]).T + p["b_ih"][l][None, :]
        gh = hp @ rb(p["w_hh"][l]).T + p["b_hh"][l][None, :]
        r = jax.nn.sigmoid(gi[:, :H] + gh[:, :H])
        z = jax.nn.sigmoid(gi[:, H:2 * H] + gh[:, H:2 * H])
        n = jnp.tanh(gi[:, 2 * H:] + r * gh[:, 2 * H:])
        hn = (1.0 - z) * n + z * hp
        newh.append(hn)
        x = hn
    logits = x @ rb(p["out_w"]).T + p["out_b"][None, :]
    return jax.nn.log_softmax(logits, axis=1), jnp.stack(newh, 0), aw


if __name__ == "__main__":
    OUTPUT_SIZE = 16
    NUM_LAYERS = 2
    HIDDEN_SIZE = 32
    MAX_LENGTH = 10

    key = jax.random.PRNGKey(0)
    kp, kh, ke = jax.random.split(key, 3)

    params = init_params(kp, output_size=OUTPUT_SIZE, num_layers=NUM_LAYERS,
                         hidden_size=HIDDEN_SIZE, max_length=MAX_LENGTH)
    kparams = pack_params(params, hidden_size=HIDDEN_SIZE, num_layers=NUM_LAYERS,
                          output_size=OUTPUT_SIZE, max_length=MAX_LENGTH)

    tok = jnp.array([3], dtype=jnp.int32)                              # _input
    hidden = jax.random.normal(kh, (NUM_LAYERS, 1, HIDDEN_SIZE), jnp.float32)
    encoder_outputs = jax.random.normal(ke, (MAX_LENGTH, HIDDEN_SIZE), jnp.float32)

    fwd = jax.jit(functools.partial(
        attn_decoder_forward, hidden_size=HIDDEN_SIZE, num_layers=NUM_LAYERS,
        output_size=OUTPUT_SIZE, max_length=MAX_LENGTH))

    logp, new_hidden, attn_w = fwd(tok, hidden, encoder_outputs, kparams)
    jax.block_until_ready((logp, new_hidden, attn_w))

    ref_logp, ref_hidden, ref_aw = reference_forward(
        tok, hidden, encoder_outputs, params,
        hidden_size=HIDDEN_SIZE, num_layers=NUM_LAYERS)

    assert logp.shape == (1, OUTPUT_SIZE)
    assert new_hidden.shape == (NUM_LAYERS, 1, HIDDEN_SIZE)
    assert attn_w.shape == (1, MAX_LENGTH)
    # bf16 weight storage + bf16 matmul activations + approx softmax reciprocal
    # introduce ~1e-3..1e-2 drift vs. the f32 reference, hence the loosened tolerance.
    assert jnp.allclose(logp, ref_logp, atol=5e-2, rtol=5e-2)
    assert jnp.allclose(new_hidden, ref_hidden, atol=5e-2, rtol=5e-2)
    assert jnp.allclose(attn_w, ref_aw, atol=5e-2, rtol=5e-2)

    print("KERNEL_OK")
</pallas_src>

<mosaic_0001>
module attributes {stable_mosaic.version = 11 : i64} {
  func.func @attn_decoder_kernel(%arg0: i32, %arg1: memref<1xi32, #tpu.memory_space<smem>>, %arg2: memref<1x1x32xbf16, #tpu.memory_space<vmem>>, %arg3: memref<64x128xbf16, #tpu.memory_space<vmem>>, %arg4: memref<1x128xf32, #tpu.memory_space<vmem>>, %arg5: memref<64x32xbf16, #tpu.memory_space<vmem>>, %arg6: memref<1x32xf32, #tpu.memory_space<vmem>>, %arg7: memref<2x64x128xbf16, #tpu.memory_space<vmem>>, %arg8: memref<2x128xf32, #tpu.memory_space<vmem>>, %arg9: memref<32x128xbf16, #tpu.memory_space<vmem>>, %arg10: memref<1x128xf32, #tpu.memory_space<vmem>>, %arg11: memref<2x32xf32, #tpu.memory_space<vmem>>, %arg12: memref<128x32xf32, #tpu.memory_space<vmem>>, %arg13: memref<1x128xf32, #tpu.memory_space<vmem>>, %arg14: memref<1x128xf32, #tpu.memory_space<vmem>>, %arg15: memref<2x32xf32, #tpu.memory_space<vmem>>) attributes {dimension_semantics = [#tpu.dimension_semantics<arbitrary>], iteration_bounds = array<i64: 1>, scalar_prefetch = 1 : i64, scratch_operands = 0 : i64, tpu.core_type = #tpu.core_type<tc>, window_params = [{transform_indices = @transform_0, window_bounds = array<i64: 1, 1, 32>}, {pipeline_mode = #tpu.pipeline_mode<synchronous>, transform_indices = @transform_1, window_bounds = array<i64: 64, 128>}, {pipeline_mode = #tpu.pipeline_mode<synchronous>, transform_indices = @transform_2, window_bounds = array<i64: 1, 128>}, {pipeline_mode = #tpu.pipeline_mode<synchronous>, transform_indices = @transform_3, window_bounds = array<i64: 64, 32>}, {pipeline_mode = #tpu.pipeline_mode<synchronous>, transform_indices = @transform_4, window_bounds = array<i64: 1, 32>}, {pipeline_mode = #tpu.pipeline_mode<synchronous>, transform_indices = @transform_5, window_bounds = array<i64: 2, 64, 128>}, {pipeline_mode = #tpu.pipeline_mode<synchronous>, transform_indices = @transform_6, window_bounds = array<i64: 2, 128>}, {pipeline_mode = #tpu.pipeline_mode<synchronous>, transform_indices = @transform_7, window_bounds = array<i64: 32, 128>}, {pipeline_mode = #tpu.pipeline_mode<synchronous>, transform_indices = @transform_8, window_bounds = array<i64: 1, 128>}, {pipeline_mode = #tpu.pipeline_mode<synchronous>, transform_indices = @transform_9, window_bounds = array<i64: 2, 32>}, {pipeline_mode = #tpu.pipeline_mode<synchronous>, transform_indices = @transform_10, window_bounds = array<i64: 128, 32>}, {pipeline_mode = #tpu.pipeline_mode<synchronous>, transform_indices = @transform_11, window_bounds = array<i64: 1, 128>}, {pipeline_mode = #tpu.pipeline_mode<synchronous>, transform_indices = @transform_12, window_bounds = array<i64: 1, 128>}, {pipeline_mode = #tpu.pipeline_mode<synchronous>, transform_indices = @transform_13, window_bounds = array<i64: 2, 32>}]} {
    %c0 = arith.constant 0 : index
    %c0_0 = arith.constant 0 : index
    %c0_1 = arith.constant 0 : index
    %0 = vector.load %arg2[%c0, %c0_0, %c0_1] : memref<1x1x32xbf16, #tpu.memory_space<vmem>>, vector<1x1x32xbf16>
    %1 = vector.shape_cast %0 : vector<1x1x32xbf16> to vector<1x32xbf16>
    %2 = arith.extf %1 : vector<1x32xbf16> to vector<1x32xf32>
    %c0_2 = arith.constant 0 : index
    %c0_3 = arith.constant 0 : index
    %3 = vector.load %arg11[%c0_2, %c0_3] : memref<2x32xf32, #tpu.memory_space<vmem>>, vector<1x32xf32>
    %4 = tpu.concatenate %2, %3 in 1 : vector<1x32xf32>, vector<1x32xf32> -> vector<1x64xf32>
    %5 = arith.truncf %4 : vector<1x64xf32> to vector<1x64xbf16>
    %c0_4 = arith.constant 0 : index
    %c0_5 = arith.constant 0 : index
    %6 = vector.load %arg3[%c0_4, %c0_5] : memref<64x128xbf16, #tpu.memory_space<vmem>>, vector<64x128xbf16>
    %cst = arith.constant dense<0.000000e+00> : vector<1x128xf32>
    %7 = tpu.matmul %5, %6, %cst {dimension_numbers = #tpu.dot_dimension_numbers<[1], [0], [0], [1], [0, 0, 1, 1], [], []>} : vector<1x64xbf16>, vector<64x128xbf16>, vector<1x128xf32> -> vector<1x128xf32>
    %c0_6 = arith.constant 0 : index
    %c0_7 = arith.constant 0 : index
    %8 = vector.load %arg4[%c0_6, %c0_7] : memref<1x128xf32, #tpu.memory_space<vmem>>, vector<1x128xf32>
    %9 = arith.addf %7, %8 : vector<1x128xf32>
    %cst_8 = arith.constant dense<0xFF800000> : vector<1xf32>
    %10 = vector.multi_reduction <maximumf>, %9, %cst_8 [1] : vector<1x128xf32> to vector<1xf32>
    %11 = vector.shape_cast %10 : vector<1xf32> to vector<1x1xf32>
    %12 = vector.broadcast %11 : vector<1x1xf32> to vector<1x128xf32>
    %13 = arith.subf %9, %12 : vector<1x128xf32>
    %14 = math.exp %13 : vector<1x128xf32>
    %cst_9 = arith.constant dense<0.000000e+00> : vector<1xf32>
    %15 = vector.multi_reduction <add>, %14, %cst_9 [1] : vector<1x128xf32> to vector<1xf32>
    %16 = vector.shape_cast %15 : vector<1xf32> to vector<1x1xf32>
    %17 = tpu.reciprocal %16 {approx = true} : vector<1x1xf32> -> vector<1x1xf32>
    %18 = vector.broadcast %17 : vector<1x1xf32> to vector<1x128xf32>
    %19 = arith.mulf %14, %18 : vector<1x128xf32>
    %c0_10 = arith.constant 0 : index
    %c0_11 = arith.constant 0 : index
    %20 = vector.load %arg14[%c0_10, %c0_11] : memref<1x128xf32, #tpu.memory_space<vmem>>, vector<1x128xf32>
    tpu.vector_store %arg14[%c0_10, %c0_11], %19 {strides = array<i32>} : memref<1x128xf32, #tpu.memory_space<vmem>>, vector<1x128xf32>,
    %c0_12 = arith.constant 0 : index
    %c0_13 = arith.constant 0 : index
    %21 = vector.load %arg12[%c0_12, %c0_13] : memref<128x32xf32, #tpu.memory_space<vmem>>, vector<128x32xf32>
    %cst_14 = arith.constant dense<0.000000e+00> : vector<1x32xf32>
    %22 = tpu.matmul %19, %21, %cst_14 {dimension_numbers = #tpu.dot_dimension_numbers<[1], [0], [0], [1], [0, 0, 1, 1], [], []>} : vector<1x128xf32>, vector<128x32xf32>, vector<1x32xf32> -> vector<1x32xf32>
    %23 = tpu.concatenate %2, %22 in 1 : vector<1x32xf32>, vector<1x32xf32> -> vector<1x64xf32>
    %24 = arith.truncf %23 : vector<1x64xf32> to vector<1x64xbf16>
    %c0_15 = arith.constant 0 : index
    %c0_16 = arith.constant 0 : index
    %25 = vector.load %arg5[%c0_15, %c0_16] : memref<64x32xbf16, #tpu.memory_space<vmem>>, vector<64x32xbf16>
    %cst_17 = arith.constant dense<0.000000e+00> : vector<1x32xf32>
    %26 = tpu.matmul %24, %25, %cst_17 {dimension_numbers = #tpu.dot_dimension_numbers<[1], [0], [0], [1], [0, 0, 1, 1], [], []>} : vector<1x64xbf16>, vector<64x32xbf16>, vector<1x32xf32> -> vector<1x32xf32>
    %c0_18 = arith.constant 0 : index
    %c0_19 = arith.constant 0 : index
    %27 = vector.load %arg6[%c0_18, %c0_19] : memref<1x32xf32, #tpu.memory_space<vmem>>, vector<1x32xf32>
    %28 = arith.addf %26, %27 : vector<1x32xf32>
    %cst_20 = arith.constant 0.000000e+00 : f32
    %29 = vector.broadcast %cst_20 : f32 to vector<1x32xf32>
    %30 = arith.maximumf %28, %29 : vector<1x32xf32>
    %c0_21 = arith.constant 0 : index
    %c0_22 = arith.constant 0 : index
    %31 = vector.load %arg11[%c0_21, %c0_22] : memref<2x32xf32, #tpu.memory_space<vmem>>, vector<1x32xf32>
    %32 = tpu.concatenate %30, %31 in 1 : vector<1x32xf32>, vector<1x32xf32> -> vector<1x64xf32>
    %33 = arith.truncf %32 : vector<1x64xf32> to vector<1x64xbf16>
    %c0_23 = arith.constant 0 : index
    %c0_24 = arith.constant 0 : index
    %c0_25 = arith.constant 0 : index
    %34 = vector.load %arg7[%c0_23, %c0_24, %c0_25] : memref<2x64x128xbf16, #tpu.memory_space<vmem>>, vector<1x64x128xbf16>
    %35 = vector.shape_cast %34 : vector<1x64x128xbf16> to vector<64x128xbf16>
    %cst_26 = arith.constant dense<0.000000e+00> : vector<1x128xf32>
    %36 = tpu.matmul %33, %35, %cst_26 {dimension_numbers = #tpu.dot_dimension_numbers<[1], [0], [0], [1], [0, 0, 1, 1], [], []>} : vector<1x64xbf16>, vector<64x128xbf16>, vector<1x128xf32> -> vector<1x128xf32>
    %c0_27 = arith.constant 0 : index
    %c0_28 = arith.constant 0 : index
    %37 = vector.load %arg8[%c0_27, %c0_28] : memref<2x128xf32, #tpu.memory_space<vmem>>, vector<1x128xf32>
    %38 = arith.addf %36, %37 : vector<1x128xf32>
    %39 = vector.extract_strided_slice %38 {offsets = [0, 0], sizes = [1, 64], strides = [1, 1]} : vector<1x128xf32> to vector<1x64xf32>
    %40 = arith.negf %39 : vector<1x64xf32>
    %41 = math.exp %40 : vector<1x64xf32>
    %cst_29 = arith.constant 1.000000e+00 : f32
    %42 = vector.broadcast %cst_29 : f32 to vector<1x64xf32>
    %43 = arith.addf %42, %41 : vector<1x64xf32>
    %44 = arith.divf %42, %43 : vector<1x64xf32>
    %45 = vector.extract_strided_slice %44 {offsets = [0, 0], sizes = [1, 32], strides = [1, 1]} : vector<1x64xf32> to vector<1x32xf32>
    %46 = vector.extract_strided_slice %44 {offsets = [0, 32], sizes = [1, 32], strides = [1, 1]} : vector<1x64xf32> to vector<1x32xf32>
    %47 = vector.extract_strided_slice %38 {offsets = [0, 64], sizes = [1, 32], strides = [1, 1]} : vector<1x128xf32> to vector<1x32xf32>
    %48 = vector.extract_strided_slice %38 {offsets = [0, 96], sizes = [1, 32], strides = [1, 1]} : vector<1x128xf32> to vector<1x32xf32>
    %49 = arith.mulf %45, %48 : vector<1x32xf32>
    %50 = arith.addf %47, %49 : vector<1x32xf32>
    %51 = math.tanh %50 : vector<1x32xf32>
    %cst_30 = arith.constant 1.000000e+00 : f32
    %52 = vector.broadcast %cst_30 : f32 to vector<1x32xf32>
    %53 = arith.subf %52, %46 : vector<1x32xf32>
    %54 = arith.mulf %53, %51 : vector<1x32xf32>
    %55 = arith.mulf %46, %31 : vector<1x32xf32>
    %56 = arith.addf %54, %55 : vector<1x32xf32>
    %c0_31 = arith.constant 0 : index
    %c0_32 = arith.constant 0 : index
    %57 = vector.load %arg15[%c0_31, %c0_32] : memref<2x32xf32, #tpu.memory_space<vmem>>, vector<1x32xf32>
    tpu.vector_store %arg15[%c0_31, %c0_32], %56 {strides = array<i32>} : memref<2x32xf32, #tpu.memory_space<vmem>>, vector<1x32xf32>,
    %c1 = arith.constant 1 : index
    %c0_33 = arith.constant 0 : index
    %58 = vector.load %arg11[%c1, %c0_33] : memref<2x32xf32, #tpu.memory_space<vmem>>, vector<1x32xf32>
    %59 = tpu.concatenate %56, %58 in 1 : vector<1x32xf32>, vector<1x32xf32> -> vector<1x64xf32>
    %60 = arith.truncf %59 : vector<1x64xf32> to vector<1x64xbf16>
    %c1_34 = arith.constant 1 : index
    %c0_35 = arith.constant 0 : index
    %c0_36 = arith.constant 0 : index
    %61 = vector.load %arg7[%c1_34, %c0_35, %c0_36] : memref<2x64x128xbf16, #tpu.memory_space<vmem>>, vector<1x64x128xbf16>
    %62 = vector.shape_cast %61 : vector<1x64x128xbf16> to vector<64x128xbf16>
    %cst_37 = arith.constant dense<0.000000e+00> : vector<1x128xf32>
    %63 = tpu.matmul %60, %62, %cst_37 {dimension_numbers = #tpu.dot_dimension_numbers<[1], [0], [0], [1], [0, 0, 1, 1], [], []>} : vector<1x64xbf16>, vector<64x128xbf16>, vector<1x128xf32> -> vector<1x128xf32>
    %c1_38 = arith.constant 1 : index
    %c0_39 = arith.constant 0 : index
    %64 = vector.load %arg8[%c1_38, %c0_39] : memref<2x128xf32, #tpu.memory_space<vmem>>, vector<1x128xf32>
    %65 = arith.addf %63, %64 : vector<1x128xf32>
    %66 = vector.extract_strided_slice %65 {offsets = [0, 0], sizes = [1, 64], strides = [1, 1]} : vector<1x128xf32> to vector<1x64xf32>
    %67 = arith.negf %66 : vector<1x64xf32>
    %68 = math.exp %67 : vector<1x64xf32>
    %cst_40 = arith.constant 1.000000e+00 : f32
    %69 = vector.broadcast %cst_40 : f32 to vector<1x64xf32>
    %70 = arith.addf %69, %68 : vector<1x64xf32>
    %71 = arith.divf %69, %70 : vector<1x64xf32>
    %72 = vector.extract_strided_slice %71 {offsets = [0, 0], sizes = [1, 32], strides = [1, 1]} : vector<1x64xf32> to vector<1x32xf32>
    %73 = vector.extract_strided_slice %71 {offsets = [0, 32], sizes = [1, 32], strides = [1, 1]} : vector<1x64xf32> to vector<1x32xf32>
    %74 = vector.extract_strided_slice %65 {offsets = [0, 64], sizes = [1, 32], strides = [1, 1]} : vector<1x128xf32> to vector<1x32xf32>
    %75 = vector.extract_strided_slice %65 {offsets = [0, 96], sizes = [1, 32], strides = [1, 1]} : vector<1x128xf32> to vector<1x32xf32>
    %76 = arith.mulf %72, %75 : vector<1x32xf32>
    %77 = arith.addf %74, %76 : vector<1x32xf32>
    %78 = math.tanh %77 : vector<1x32xf32>
    %cst_41 = arith.constant 1.000000e+00 : f32
    %79 = vector.broadcast %cst_41 : f32 to vector<1x32xf32>
    %80 = arith.subf %79, %73 : vector<1x32xf32>
    %81 = arith.mulf %80, %78 : vector<1x32xf32>
    %82 = arith.mulf %73, %58 : vector<1x32xf32>
    %83 = arith.addf %81, %82 : vector<1x32xf32>
    %c1_42 = arith.constant 1 : index
    %c0_43 = arith.constant 0 : index
    %84 = vector.load %arg15[%c1_42, %c0_43] : memref<2x32xf32, #tpu.memory_space<vmem>>, vector<1x32xf32>
    tpu.vector_store %arg15[%c1_42, %c0_43], %83 {strides = array<i32>} : memref<2x32xf32, #tpu.memory_space<vmem>>, vector<1x32xf32>,
    %85 = arith.truncf %83 : vector<1x32xf32> to vector<1x32xbf16>
    %c0_44 = arith.constant 0 : index
    %c0_45 = arith.constant 0 : index
    %86 = vector.load %arg9[%c0_44, %c0_45] : memref<32x128xbf16, #tpu.memory_space<vmem>>, vector<32x128xbf16>
    %cst_46 = arith.constant dense<0.000000e+00> : vector<1x128xf32>
    %87 = tpu.matmul %85, %86, %cst_46 {dimension_numbers = #tpu.dot_dimension_numbers<[1], [0], [0], [1], [0, 0, 1, 1], [], []>} : vector<1x32xbf16>, vector<32x128xbf16>, vector<1x128xf32> -> vector<1x128xf32>
    %c0_47 = arith.constant 0 : index
    %c0_48 = arith.constant 0 : index
    %88 = vector.load %arg10[%c0_47, %c0_48] : memref<1x128xf32, #tpu.memory_space<vmem>>, vector<1x128xf32>
    %89 = arith.addf %87, %88 : vector<1x128xf32>
    %cst_49 = arith.constant dense<0xFF800000> : vector<1xf32>
    %90 = vector.multi_reduction <maximumf>, %89, %cst_49 [1] : vector<1x128xf32> to vector<1xf32>
    %91 = vector.shape_cast %90 : vector<1xf32> to vector<1x1xf32>
    %92 = vector.broadcast %91 : vector<1x1xf32> to vector<1x128xf32>
    %93 = arith.subf %89, %92 : vector<1x128xf32>
    %94 = math.exp %93 : vector<1x128xf32>
    %cst_50 = arith.constant dense<0.000000e+00> : vector<1xf32>
    %95 = vector.multi_reduction <add>, %94, %cst_50 [1] : vector<1x128xf32> to vector<1xf32>
    %96 = vector.shape_cast %95 : vector<1xf32> to vector<1x1xf32>
    %97 = math.log %96 : vector<1x1xf32>
    %98 = vector.broadcast %97 : vector<1x1xf32> to vector<1x128xf32>
    %99 = arith.subf %93, %98 : vector<1x128xf32>
    %c0_51 = arith.constant 0 : index
    %c0_52 = arith.constant 0 : index
    %100 = vector.load %arg13[%c0_51, %c0_52] : memref<1x128xf32, #tpu.memory_space<vmem>>, vector<1x128xf32>
    tpu.vector_store %arg13[%c0_51, %c0_52], %99 {strides = array<i32>} : memref<1x128xf32, #tpu.memory_space<vmem>>, vector<1x128xf32>,
    return
  }
  func.func @transform_0(%arg0: i32, %arg1: memref<1xi32, #tpu.memory_space<smem>>) -> (i32, i32, i32) {
    %c0 = arith.constant 0 : index
    %0 = memref.load %arg1[%c0] : memref<1xi32, #tpu.memory_space<smem>>
    %c0_i32 = arith.constant 0 : i32
    %c0_i32_0 = arith.constant 0 : i32
    %c0_i32_1 = arith.constant 0 : i32
    return %0, %c0_i32, %c0_i32_0 : i32, i32, i32
  }
  func.func @transform_1(%arg0: i32, %arg1: memref<1xi32, #tpu.memory_space<smem>>) -> (i32, i32) {
    %c0_i32 = arith.constant 0 : i32
    %c0_i32_0 = arith.constant 0 : i32
    %c0_i32_1 = arith.constant 0 : i32
    return %c0_i32, %c0_i32_0 : i32, i32
  }
  func.func @transform_2(%arg0: i32, %arg1: memref<1xi32, #tpu.memory_space<smem>>) -> (i32, i32) {
    %c0_i32 = arith.constant 0 : i32
    %c0_i32_0 = arith.constant 0 : i32
    %c0_i32_1 = arith.constant 0 : i32
    return %c0_i32, %c0_i32_0 : i32, i32
  }
  func.func @transform_3(%arg0: i32, %arg1: memref<1xi32, #tpu.memory_space<smem>>) -> (i32, i32) {
    %c0_i32 = arith.constant 0 : i32
    %c0_i32_0 = arith.constant 0 : i32
    %c0_i32_1 = arith.constant 0 : i32
    return %c0_i32, %c0_i32_0 : i32, i32
  }
  func.func @transform_4(%arg0: i32, %arg1: memref<1xi32, #tpu.memory_space<smem>>) -> (i32, i32) {
    %c0_i32 = arith.constant 0 : i32
    %c0_i32_0 = arith.constant 0 : i32
    %c0_i32_1 = arith.constant 0 : i32
    return %c0_i32, %c0_i32_0 : i32, i32
  }
  func.func @transform_5(%arg0: i32, %arg1: memref<1xi32, #tpu.memory_space<smem>>) -> (i32, i32, i32) {
    %c0_i32 = arith.constant 0 : i32
    %c0_i32_0 = arith.constant 0 : i32
    %c0_i32_1 = arith.constant 0 : i32
    %c0_i32_2 = arith.constant 0 : i32
    return %c0_i32, %c0_i32_0, %c0_i32_1 : i32, i32, i32
  }
  func.func @transform_6(%arg0: i32, %arg1: memref<1xi32, #tpu.memory_space<smem>>) -> (i32, i32) {
    %c0_i32 = arith.constant 0 : i32
    %c0_i32_0 = arith.constant 0 : i32
    %c0_i32_1 = arith.constant 0 : i32
    return %c0_i32, %c0_i32_0 : i32, i32
  }
  func.func @transform_7(%arg0: i32, %arg1: memref<1xi32, #tpu.memory_space<smem>>) -> (i32, i32) {
    %c0_i32 = arith.constant 0 : i32
    %c0_i32_0 = arith.constant 0 : i32
    %c0_i32_1 = arith.constant 0 : i32
    return %c0_i32, %c0_i32_0 : i32, i32
  }
  func.func @transform_8(%arg0: i32, %arg1: memref<1xi32, #tpu.memory_space<smem>>) -> (i32, i32) {
    %c0_i32 = arith.constant 0 : i32
    %c0_i32_0 = arith.constant 0 : i32
    %c0_i32_1 = arith.constant 0 : i32
    return %c0_i32, %c0_i32_0 : i32, i32
  }
  func.func @transform_9(%arg0: i32, %arg1: memref<1xi32, #tpu.memory_space<smem>>) -> (i32, i32) {
    %c0_i32 = arith.constant 0 : i32
    %c0_i32_0 = arith.constant 0 : i32
    %c0_i32_1 = arith.constant 0 : i32
    return %c0_i32, %c0_i32_0 : i32, i32
  }
  func.func @transform_10(%arg0: i32, %arg1: memref<1xi32, #tpu.memory_space<smem>>) -> (i32, i32) {
    %c0_i32 = arith.constant 0 : i32
    %c0_i32_0 = arith.constant 0 : i32
    %c0_i32_1 = arith.constant 0 : i32
    return %c0_i32, %c0_i32_0 : i32, i32
  }
  func.func @transform_11(%arg0: i32, %arg1: memref<1xi32, #tpu.memory_space<smem>>) -> (i32, i32) {
    %c0_i32 = arith.constant 0 : i32
    %c0_i32_0 = arith.constant 0 : i32
    %c0_i32_1 = arith.constant 0 : i32
    return %c0_i32, %c0_i32_0 : i32, i32
  }
  func.func @transform_12(%arg0: i32, %arg1: memref<1xi32, #tpu.memory_space<smem>>) -> (i32, i32) {
    %c0_i32 = arith.constant 0 : i32
    %c0_i32_0 = arith.constant 0 : i32
    %c0_i32_1 = arith.constant 0 : i32
    return %c0_i32, %c0_i32_0 : i32, i32
  }
  func.func @transform_13(%arg0: i32, %arg1: memref<1xi32, #tpu.memory_space<smem>>) -> (i32, i32) {
    %c0_i32 = arith.constant 0 : i32
    %c0_i32_0 = arith.constant 0 : i32
    %c0_i32_1 = arith.constant 0 : i32
    return %c0_i32, %c0_i32_0 : i32, i32
  }
}

</mosaic_0001>

<bundles_post_ra>
// kernel: attn_decoder_forward.1
= control target key start
LH: loop header
LB: loop body
LE: loop exit
PB: predicated region body
PF: predicated region fallthrough
CT: control target
= control target key end

     0   :  { %21 = vsyncpa [#allocation5], 0  ;;  %s951_s15 = smov 32   ;;  %v952_v1 = vmov 0.0   ;;  %vm953_vm0 = vmmov 0   ;;  %s1264_s0 = inlined_call_operand.<no memory space> [shape: s32[1], index: 0, kind: input, shape index: {}]   ;;  %s1265_s1 = inlined_call_operand.vmem [shape: bf16[16,1,32], index: 1, kind: input, shape index: {}]   ;;  %s1266_s2 = inlined_call_operand.vmem [shape: bf16[64,128], index: 2, kind: input, shape index: {}]   ;;  %s1267_s3 = inlined_call_operand.vmem [shape: f32[1,128], index: 3, kind: input, shape index: {}]   ;;  %s1268_s4 = inlined_call_operand.vmem [shape: bf16[64,32], index: 4, kind: input, shape index: {}]   ;;  %s1269_s5 = inlined_call_operand.vmem [shape: f32[1,32], index: 5, kind: input, shape index: {}]   ;;  %s1270_s6 = inlined_call_operand.vmem [shape: bf16[2,64,128], index: 6, kind: input, shape index: {}]   ;;  %s1271_s7 = inlined_call_operand.vmem [shape: f32[2,128], index: 7, kind: input, shape index: {}]   ;;  %s1272_s8 = inlined_call_operand.vmem [shape: bf16[32,128], index: 8, kind: input, shape index: {}]   ;;  %s1273_s9 = inlined_call_operand.vmem [shape: f32[1,128], index: 9, kind: input, shape index: {}]   ;;  %s1274_s10 = inlined_call_operand.vmem [shape: f32[2,32], index: 10, kind: input, shape index: {}, may-alias: {10,14}]   ;;  %s1275_s11 = inlined_call_operand.vmem [shape: f32[128,32], index: 11, kind: input, shape index: {}]   ;;  %s1276_s12 = inlined_call_operand.hbm [shape: f32[1,128], index: 12, kind: output, shape index: {0}]   ;;  %s1277_s13 = inlined_call_operand.hbm [shape: f32[1,128], index: 13, kind: output, shape index: {1}]   ;;  %s1278_s14 = inlined_call_operand.vmem [shape: f32[2,32], index: 14, kind: output, shape index: {2}, may-alias: {10,14}]  }
   0x1   :  { %v62_v0 = vld [vmem:[%s1274_s10] sm:$0x1]  ;;  %742 = vmatprep.subr.bf16.mxu0 %v952_v1  ;;  %v866_v3 = vld [vmem:[%s1266_s2 + $0x8] sm:$0xff]   ;;  %750 = vmatprep.mubr.msk.bf16.mxu0 %vm953_vm0, %v952_v1  ;;  %v867_v4 = vld [vmem:[%s1266_s2 + $0x10] sm:$0xff]  }
   0x2   :  { %64 = vrot.lane.b32.xlu0 %v62_v0, %s951_s15  ;;  %v865_v2 = vld [vmem:[%s1266_s2] sm:$0xff]   ;;  %786 = vmatprep.mubr.msk.f32.mxu1 %vm953_vm0, %v952_v1  ;;  %v868_v5 = vld [vmem:[%s1266_s2 + $0x18] sm:$0xff]  }
   0x3   :  { %743 = vmatpush3.bf16.msra.mxu0 %v865_v2 }
   0x4   :  { %744 = vmatprep.subr.bf16.mxu0 %v952_v1 }
   0x7   :  { %745 = vmatpush3.bf16.msra.mxu0 %v866_v3 }
   0x8   :  { %746 = vmatprep.subr.bf16.mxu0 %v952_v1 }
   0xb   :  { %747 = vmatpush3.bf16.msra.mxu0 %v867_v4 }
   0xc   :  { %748 = vmatprep.subr.bf16.mxu0 %v952_v1 }
   0xf   :  { %749 = vmatpush3.bf16.msra.mxu0 %v868_v5 }
  0x10   :  { %22 = vsyncpa [#allocation7], 0  ;;  %789 = vmatprep.subr.bf16.mxu0 %v952_v1  ;;  %p55_p0 = scmp.lt.s32.totalorder %s1264_s0, 15  ;;  %vm67_vm1 = vcmask 261120   ;;  %vm103_vm2 = vcmask 523264   ;;  %vm147_vm3 = vcmask 1040384  }
  0x11   :  { %v78_v11 = vld [vmem:[%s1267_s3] sm:$0x1]  ;;  %v161_v19 = vld [vmem:[%s1275_s11 + $0x8] sm:$0xff]  ;;  %v162_v20 = vld [vmem:[%s1275_s11 + $0x10] sm:$0xff]  ;;  %v954_v21 = vmov 0.0|0.0   ;;  %vm441_vm4 = vcmask 253952  }
  0x12   :  { %s1280_s0 = smov (!%p55_p0, %s1264_s0), 15  ;;  %v160_v18 = vld [vmem:[%s1275_s11] sm:$0xff]  ;;  %833 = vmatprep.subr.bf16.mxu1 %v954_v21  ;;  %v163_v23 = vld [vmem:[%s1275_s11 + $0x18] sm:$0xff]  ;;  %v165_v26 = vld [vmem:[%s1275_s11 + $0x28] sm:$0xff] }
  0x13   :  { %s57_s30 = scalar_lea.vmem %s1265_s1, %s1280_s0  ;;  %v834_v22 = vpack.c.bf16 %v161_v19, %v160_v18  ;;  %v837_v24 = vpack.c.bf16 %v163_v23, %v162_v20  ;;  %v164_v25 = vld [vmem:[%s1275_s11 + $0x20] sm:$0xff]  ;;  %v166_v28 = vld [vmem:[%s1275_s11 + $0x30] sm:$0xff]  ;;  %v167_v29 = vld [vmem:[%s1275_s11 + $0x38] sm:$0xff]  ;;  %s956_s0 = smov 96  }
  0x14   :  { %v1068_v6 = vld [vmem:[%s57_s30] sm:$0x1]  ;;  %v840_v27 = vpack.c.bf16 %v165_v26, %v164_v25  ;;  %v843_v30 = vpack.c.bf16 %v167_v29, %v166_v28  ;;  %v169_v32 = vld [vmem:[%s1275_s11 + $0x48] sm:$0xff]  ;;  %v170_v39 = vld [vmem:[%s1275_s11 + $0x50] sm:$0xff] }
  0x15   :  { %v61_v7 = vunpack.c.l.bf16 %v1068_v6  ;;  %835 = vmatpush3.bf16.msra.mxu1 %v834_v22  ;;  %v168_v31 = vld [vmem:[%s1275_s11 + $0x40] sm:$0xff]  ;;  %v171_v40 = vld [vmem:[%s1275_s11 + $0x58] sm:$0xff]  ;;  %v173_v43 = vld [vmem:[%s1275_s11 + $0x68] sm:$0xff] }
  0x16   :  { %836 = vmatprep.subr.bf16.mxu1 %v954_v21  ;;  %v846_v33 = vpack.c.bf16 %v169_v32, %v168_v31  ;;  %v849_v41 = vpack.c.bf16 %v171_v40, %v170_v39  ;;  %v172_v42 = vld [vmem:[%s1275_s11 + $0x60] sm:$0xff]  ;;  %v174_v45 = vld [vmem:[%s1275_s11 + $0x70] sm:$0xff]  ;;  %v175_v46 = vld [vmem:[%s1275_s11 + $0x78] sm:$0xff] }
  0x17   :  { %v852_v44 = vpack.c.bf16 %v173_v43, %v172_v42  ;;  %v855_v47 = vpack.c.bf16 %v175_v46, %v174_v45  ;;  %v869_v51 = vld [vmem:[%s1268_s4] sm:$0xff]   ;;  %v870_v52 = vld [vmem:[%s1268_s4 + $0x8] sm:$0xff]   ;;  %v871_v53 = vld [vmem:[%s1268_s4 + $0x10] sm:$0xff]  }
  0x18   :  { %v872_v54 = vld [vmem:[%s1268_s4 + $0x18] sm:$0xff]   ;;  %v329_v57 = vld [vmem:[%s1274_s10] sm:$0x1]  ;;  %v874_v62 = vld [vmem:[%s1270_s6 + $0x8] sm:$0xff]  }
  0x19   :  { %838 = vmatpush3.bf16.msra.mxu1 %v837_v24  ;;  %v873_v60 = vld [vmem:[%s1270_s6] sm:$0xff]   ;;  %v875_v63 = vld [vmem:[%s1270_s6 + $0x10] sm:$0xff]   ;;  %v876_v0 = vld [vmem:[%s1270_s6 + $0x18] sm:$0xff]  }
  0x1a   :  { %839 = vmatprep.subr.bf16.mxu1 %v954_v21  ;;  %v260_v2 = vld [vmem:[%s1269_s5] sm:$0x1]  ;;  %s955_s5 = smov 64   ;;  %v879_v28 = vld [vmem:[%s1270_s6 + $0x30] sm:$0xff]   ;;  %v880_v31 = vld [vmem:[%s1270_s6 + $0x38] sm:$0xff]  }
  0x1b   :  { %v877_v26 = vld [vmem:[%s1270_s6 + $0x20] sm:$0xff]  }
  0x1d   :  { %841 = vmatpush3.bf16.msra.mxu1 %v840_v27  ;;  %v878_v27 = vld [vmem:[%s1270_s6 + $0x28] sm:$0xff]  }
  0x1e   :  { %842 = vmatprep.subr.bf16.mxu1 %v954_v21 }
  0x21   :  { %844 = vmatpush3.bf16.msra.mxu1 %v843_v30  ;;  %v443_v30 = vld [vmem:[%s1274_s10 + $0x1] sm:$0x1] }
  0x22   :  { %845 = vmatprep.subr.bf16.mxu1 %v954_v21 }
  0x25   :  { %847 = vmatpush3.bf16.msra.mxu1 %v846_v33 }
  0x26   :  { %848 = vmatprep.subr.bf16.mxu1 %v954_v21 }
  0x29   :  { %850 = vmatpush3.bf16.msra.mxu1 %v849_v41  ;;  %v459_v41 = vld [vmem:[%s1271_s7 + $0x1] sm:$0x1] }
  0x2a   :  { %851 = vmatprep.subr.bf16.mxu1 %v954_v21 }
  0x2d   :  { %853 = vmatpush3.bf16.msra.mxu1 %v852_v44 }
  0x2e   :  { %854 = vmatprep.subr.bf16.mxu1 %v954_v21 }
  0x31   :  { %856 = vmatpush3.bf16.msra.mxu1 %v855_v47 }
  0x32   :  { %813 = vmatprep.subr.bf16.mxu1 %v952_v1 }
  0x74   :  { %v65_v8 = vpop.permute.xlu0 %64 }
  0x75   :  { %v68_v9 = vsel %vm67_vm1, %v61_v7, %v65_v8 }
  0x76   :  { %v69_v10 = vpack.c.bf16 %v68_v9, %v68_v9 }
  0x78   :  { %751 = vmatmul.mubr.msk.bf16.vlgmr.msra.gmra.mrb[0].mxu0 %vm103_vm2, %v69_v10 }
  0x79   :  { %797 = vmatprep.mubr.msk.bf16.mxu0 %vm953_vm0, %v952_v1  ;;  %790 = vmatpush3.bf16.msra.mxu0 %v869_v51 }
  0x7a   :  { %791 = vmatprep.subr.bf16.mxu0 %v952_v1 }
  0x7d   :  { %792 = vmatpush3.bf16.msra.mxu0 %v870_v52 }
  0x7e   :  { %793 = vmatprep.subr.bf16.mxu0 %v952_v1 }
  0x81   :  { %794 = vmatpush3.bf16.msra.mxu0 %v871_v53 }
  0x82   :  { %795 = vmatprep.subr.bf16.mxu0 %v952_v1 }
  0x85   :  { %796 = vmatpush3.bf16.msra.mxu0 %v872_v54 }
  0x86   :  { %801 = vmatprep.subr.bf16.mxu0 %v952_v1 }
 0x14b   :  { %v141_v12 = vpop.f32.mrb[0].mxu0 }
 0x14c   :  { %v142_v13 = vadd.f32 %v141_v12, %v78_v11  ;;  %v752_v14 = vpop.f32.mrb[1].mxu0  ;;  %v344_v12 = vld [vmem:[%s1271_s7] sm:$0x1] }
 0x14d   :  { %v144_v15 = vpop.f32.mrb[2].mxu0 }
 0x14e   :  { %v753_v16 = vpop.f32.mrb[3].mxu0  ;;  %v148_v17 = vsel %vm147_vm3, %v142_v13, -inf }
 0x14f   :  { %149 = vmax.xlane.f32.xlu0 %v148_v17 }
 0x1dc   :  { %v150_v34 = vpop.xlane.xlu0 %149 }
 0x1dd   :  { %v151_v35 = vsub.f32 %v142_v13, %v150_v34 }
 0x1df   :  { %v152_v36 = vmul.f32 1.442695, %v151_v35 }
 0x1e1   :  { %883 = vpow2.f32 %v152_v36 }
 0x1eb   :  { %v884_v37 = vpop.eup %883 }
 0x1ec   :  { %v154_v38 = vsel %vm147_vm3, %v884_v37, 0.0 }
 0x1ed   :  { %155 = vadd.xlane.f32.xlu1 %v154_v38 }
 0x27a   :  { %v156_v48 = vpop.xlane.xlu1 %155 }
 0x27b   :  { %885 = vrcp.f32 %v156_v48 }
 0x285   :  { %v886_v49 = vpop.eup %885 }
 0x286   :  { %v158_v50 = vmul.f32 %v886_v49, %v884_v37 }
 0x288   :  { %787 = vmatmul.mubr.f32.vlgmr.msra.gmra.mrb[0].mxu1 %v158_v50  ;;  %159 = vst [vmem:[#allocation6] sm:$0x1] %v158_v50 }
 0x289   :  { %821 = vmatprep.mubr.msk.bf16.mxu1 %vm953_vm0, %v952_v1  ;;  %814 = vmatpush3.bf16.msra.mxu1 %v877_v26 }
 0x28a   :  { %815 = vmatprep.subr.bf16.mxu1 %v952_v1 }
 0x28d   :  { %816 = vmatpush3.bf16.msra.mxu1 %v878_v27 }
 0x28e   :  { %817 = vmatprep.subr.bf16.mxu1 %v952_v1 }
 0x291   :  { %818 = vmatpush3.bf16.msra.mxu1 %v879_v28 }
 0x292   :  { %819 = vmatprep.subr.bf16.mxu1 %v952_v1 }
 0x295   :  { %820 = vmatpush3.bf16.msra.mxu1 %v880_v31 }
 0x35b   :  { %v242_v55 = vpop.f32.mrb[0].mxu1 }
 0x35c   :  { %247 = vrot.lane.b32.xlu1 %v242_v55, %s951_s15  ;;  %v788_v56 = vpop.f32.mrb[1].mxu1  ;;  %v881_v55 = vld [vmem:[%s1272_s8] sm:$0xff]  }
 0x35d   :  { %v882_v56 = vld [vmem:[%s1272_s8 + $0x8] sm:$0xff]  }
 0x360   :  { %331 = vrot.lane.b32.xlu1 %v329_v57, %s951_s15 }
 0x3ce   :  { %v248_v58 = vpop.permute.xlu1 %247 }
 0x3cf   :  { %v250_v59 = vsel %vm67_vm1, %v61_v7, %v248_v58 }
 0x3d0   :  { %v251_v61 = vpack.c.bf16 %v250_v59, %v250_v59 }
 0x3d2   :  { %798 = vmatmul.mubr.msk.bf16.vlgmr.msra.gmra.mrb[4].mxu0 %vm103_vm2, %v251_v61  ;;  %v332_v7 = vpop.permute.xlu1 %331 }
 0x3d3   :  { %802 = vmatpush3.bf16.msra.mxu0 %v873_v60  ;;  %809 = vmatprep.mubr.msk.bf16.mxu0 %vm953_vm0, %v952_v1 }
 0x3d4   :  { %803 = vmatprep.subr.bf16.mxu0 %v952_v1 }
 0x3d7   :  { %804 = vmatpush3.bf16.msra.mxu0 %v874_v62 }
 0x3d8   :  { %805 = vmatprep.subr.bf16.mxu0 %v952_v1 }
 0x3db   :  { %806 = vmatpush3.bf16.msra.mxu0 %v875_v63 }
 0x3dc   :  { %807 = vmatprep.subr.bf16.mxu0 %v952_v1 }
 0x3df   :  { %808 = vmatpush3.bf16.msra.mxu0 %v876_v0 }
 0x3e0   :  { %825 = vmatprep.subr.bf16.mxu0 %v952_v1 }
 0x4a5   :  { %v322_v3 = vpop.f32.mrb[4].mxu0 }
 0x4a6   :  { %v323_v4 = vadd.f32 %v322_v3, %v260_v2  ;;  %v799_v5 = vpop.f32.mrb[5].mxu0  ;;  %v562_v2 = vld [vmem:[%s1273_s9] sm:$0x1]  ;;  %s957_s9 = smov [#allocation6]  }
 0x4a7   :  { %v325_v6 = vpop.f32.mrb[6].mxu0  ;;  %s650_s25 = sshll.u32 %s957_s9, 4  ;;  %s651_s25 = int_to_ptr.vmem [resolvable:$true] %s650_s25 }
 0x4a8   :  { %v328_v8 = vmax.f32 %v323_v4, 0.0  ;;  %v800_v9 = vpop.f32.mrb[7].mxu0  ;;  %s903_s26 = scalar_lea.vmem %s651_s25, 16  ;;  %s907_s27 = scalar_lea.vmem %s651_s25, 32 }
 0x4a9   :  { %p904_p1 = scmp.ne.s32.totalorder %s651_s25, %s903_s26  ;;  %p908_p2 = scmp.lt.s32.totalorder %s651_s25, %s651_s25 }
 0x4aa   :  { %v334_v10 = vsel %vm67_vm1, %v328_v8, %v332_v7  ;;  %p909_p3 = scmp.lt.s32.totalorder %s907_s27, %s903_s26 }
 0x4ab   :  { %v335_v11 = vpack.c.bf16 %v334_v10, %v334_v10 }
 0x4ac   :  { %p910_p4 = por %p909_p3, %p908_p2 }
 0x4ad   :  { %810 = vmatmul.mubr.msk.bf16.vlgmr.msra.gmra.mrb[8].mxu0 %vm103_vm2, %v335_v11 }
 0x4ae   :  { %829 = vmatprep.mubr.msk.bf16.mxu0 %vm953_vm0, %v952_v1  ;;  %826 = vmatpush3.bf16.msra.mxu0 %v881_v55  ;;  %p911_p5 = pnand %p910_p4, %p904_p1 }
 0x4af   :  { %827 = vmatprep.subr.bf16.mxu0 %v952_v1 }
 0x4b2   :  { %828 = vmatpush3.bf16.msra.mxu0 %v882_v56 }
 0x580   :  { %v406_v13 = vpop.f32.mrb[8].mxu0 }
 0x581   :  { %v407_v14 = vadd.f32 %v406_v13, %v344_v12  ;;  %v811_v15 = vpop.f32.mrb[9].mxu0 }
 0x582   :  { %v409_v16 = vpop.f32.mrb[10].mxu0 }
 0x583   :  { %419 = vrot.lane.b32.xlu1 %v407_v14, %s951_s15  ;;  %v812_v17 = vpop.f32.mrb[11].mxu0  ;;  %v684_v18 = vmul.f32 -1.442695, %v407_v14 }
 0x585   :  { %887 = vpow2.f32 %v684_v18 }
 0x58f   :  { %v888_v19 = vpop.eup %887 }
 0x590   :  { %v415_v20 = vadd.f32 1.0, %v888_v19 }
 0x592   :  { %889 = vrcp.f32 %v415_v20 }
 0x59c   :  { %v890_v21 = vpop.eup %889 }
 0x59d   :  { %v429_v32 = vsub.f32 1.0, %v890_v21  ;;  %v435_v34 = vmul.f32 %v890_v21, %v332_v7 }
 0x5f5   :  { %v420_v22 = vpop.permute.xlu1 %419 }
 0x5f6   :  { %v422_v23 = vmul.f32 %v890_v21, %v420_v22 }
 0x5f8   :  { %424 = vrot.lane.b32.xlu1 %v422_v23, %s955_s5 }
 0x66a   :  { %v425_v24 = vpop.permute.xlu1 %424 }
 0x66b   :  { %v427_v25 = vadd.f32 %v425_v24, %v407_v14 }
 0x66d   :  { %891 = vtanh.f32 %v427_v25 }
 0x677   :  { %v892_v29 = vpop.eup %891 }
 0x678   :  { %431 = vrot.lane.b32.xlu1 %v892_v29, %s956_s0 }
 0x67c   :  { %445 = vrot.lane.b32.xlu1 %v443_v30, %s951_s15 }
 0x6ea   :  { %v432_v33 = vpop.permute.xlu1 %431 }
 0x6eb   :  { %v434_v35 = vmul.f32 %v432_v33, %v429_v32 }
 0x6ed   :  { %v436_v36 = vadd.f32 %v435_v34, %v434_v35 }
 0x6ee   :  { %v446_v37 = vpop.permute.xlu1 %445 }
 0x6ef   :  { %438 = vrot.lane.b32.xlu0 %v436_v36, %s956_s0 }
 0x761   :  { %v439_v38 = vpop.permute.xlu0 %438 }
 0x762   :  { %442 = vst.msk [vmem:[%s1278_s14] sm:$0x1] %vm441_vm4, %v439_v38  ;;  %v448_v39 = vsel %vm67_vm1, %v439_v38, %v446_v37 }
 0x763   :  { %v449_v40 = vpack.c.bf16 %v448_v39, %v448_v39 }
 0x765   :  { %822 = vmatmul.mubr.msk.bf16.vlgmr.msra.gmra.mrb[4].mxu1 %vm103_vm2, %v449_v40 }
 0x838   :  { %v521_v42 = vpop.f32.mrb[4].mxu1 }
 0x839   :  { %v522_v43 = vadd.f32 %v521_v42, %v459_v41  ;;  %v823_v44 = vpop.f32.mrb[5].mxu1 }
 0x83a   :  { %v524_v45 = vpop.f32.mrb[6].mxu1 }
 0x83b   :  { %534 = vrot.lane.b32.xlu1 %v522_v43, %s951_s15  ;;  %v824_v46 = vpop.f32.mrb[7].mxu1  ;;  %v698_v47 = vmul.f32 -1.442695, %v522_v43 }
 0x83d   :  { %893 = vpow2.f32 %v698_v47 }
 0x847   :  { %v894_v48 = vpop.eup %893 }
 0x848   :  { %v530_v49 = vadd.f32 1.0, %v894_v48 }
 0x84a   :  { %895 = vrcp.f32 %v530_v49 }
 0x854   :  { %v896_v50 = vpop.eup %895 }
 0x855   :  { %v544_v58 = vsub.f32 1.0, %v896_v50  ;;  %v550_v60 = vmul.f32 %v896_v50, %v446_v37 }
 0x8ad   :  { %v535_v51 = vpop.permute.xlu1 %534 }
 0x8ae   :  { %v537_v52 = vmul.f32 %v896_v50, %v535_v51 }
 0x8b0   :  { %539 = vrot.lane.b32.xlu1 %v537_v52, %s955_s5 }
 0x922   :  { %v540_v53 = vpop.permute.xlu1 %539 }
 0x923   :  { %v542_v54 = vadd.f32 %v540_v53, %v522_v43 }
 0x925   :  { %897 = vtanh.f32 %v542_v54 }
 0x92f   :  { %v898_v57 = vpop.eup %897 }
 0x930   :  { %546 = vrot.lane.b32.xlu1 %v898_v57, %s956_s0 }
 0x9a2   :  { %v547_v59 = vpop.permute.xlu1 %546 }
 0x9a3   :  { %v549_v61 = vmul.f32 %v547_v59, %v544_v58 }
 0x9a5   :  { %v551_v62 = vadd.f32 %v550_v60, %v549_v61 }
 0x9a7   :  { %v557_v63 = vpack.c.bf16 %v551_v62, %v551_v62 }
 0x9a9   :  { %564 = vrot.lane.b32.xlu1 %v557_v63, %s956_s0 }
 0xa1b   :  { %v565_v0 = vpop.permute.xlu1 %564 }
 0xa1c   :  { %830 = vmatmul.mubr.msk.bf16.vlgmr.msra.gmra.mrb[12].mxu0 %vm67_vm1, %v565_v0 }
 0xaef   :  { %v615_v1 = vpop.f32.mrb[12].mxu0 }
 0xaf0   :  { %v616_v3 = vadd.f32 %v615_v1, %v562_v2  ;;  %v831_v4 = vpop.f32.mrb[13].mxu0 }
 0xaf1   :  { %v618_v5 = vpop.f32.mrb[14].mxu0 }
 0xaf2   :  { %v832_v6 = vpop.f32.mrb[15].mxu0  ;;  %v621_v7 = vsel %vm147_vm3, %v616_v3, -inf }
 0xaf3   :  { %622 = vmax.xlane.f32.xlu0 %v621_v7 }
 0xb09   :  { %553 = vrot.lane.b32.xlu0 %v551_v62, %s956_s0 }
 0xb80   :  { %v623_v8 = vpop.xlane.xlu0 %622 }
 0xb81   :  { %v624_v9 = vsub.f32 %v616_v3, %v623_v8 }
 0xb83   :  { %v625_v10 = vmul.f32 1.442695, %v624_v9 }
 0xb84   :  { %v554_v11 = vpop.permute.xlu0 %553 }
 0xb85   :  { %899 = vpow2.f32 %v625_v10  ;;  %556 = vst.msk [vmem:[%s1278_s14 + $0x1] sm:$0x1] %vm441_vm4, %v554_v11 }
 0xb8f   :  { %v900_v12 = vpop.eup %899 }
 0xb90   :  { %v627_v13 = vsel %vm147_vm3, %v900_v12, 0.0 }
 0xb91   :  { %628 = vadd.xlane.f32.xlu1 %v627_v13 }
 0xb92   :  { %914 = shalt.err (!%p911_p5)
}
 0xb93   :  { %s915_s11 = scalar_lea.hbm %s1277_s13, 16 }
 0xb94   :  { %p916_p6 = scmp.ne.s32.totalorder %s1277_s13, %s915_s11  ;;  %p919_p7 = scmp.lt.u32.totalorder %s915_s11, %s1277_s13 }
 0xb96   :  { %p921_p8 = pnand %p919_p7, %p916_p6 }
 0xb98   :  { %924 = shalt.err (!%p921_p8)
}
 0xb99   :  { %653 = dma.vmem_to_hbm [thread:$0]  %s651_s25, 16, %s1277_s13, [#allocation7]  }
 0xb9a   :  { %s958_s1 = smov [#allocation4]  }
 0xb9b   :  { %s640_s17 = sshll.u32 %s958_s1, 4  ;;  %s641_s17 = int_to_ptr.vmem [resolvable:$true] %s640_s17 }
 0xb9c   :  { %s925_s18 = scalar_lea.vmem %s641_s17, 16  ;;  %s929_s4 = scalar_lea.vmem %s641_s17, 32 }
 0xb9d   :  { %p926_p9 = scmp.ne.s32.totalorder %s641_s17, %s925_s18  ;;  %p930_p10 = scmp.lt.s32.totalorder %s641_s17, %s641_s17 }
 0xb9e   :  { %p931_p11 = scmp.lt.s32.totalorder %s929_s4, %s925_s18 }
 0xba0   :  { %p932_p12 = por %p931_p11, %p930_p10 }
 0xba2   :  { %p933_p13 = pnand %p932_p12, %p926_p9 }
 0xc1e   :  { %v629_v14 = vpop.xlane.xlu1 %628 }
 0xc1f   :  { %901 = vlog2.f32 %v629_v14 }
 0xc29   :  { %v902_v15 = vpop.eup %901 }
 0xc2a   :  { %v631_v16 = vmul.f32 0.6931472, %v902_v15 }
 0xc2c   :  { %v632_v17 = vsub.f32 %v624_v9, %v631_v16 }
 0xc2e   :  { %633 = vst [vmem:[#allocation4] sm:$0x1] %v632_v17 }
 0xc2f   :  { %936 = shalt.err (!%p933_p13)
}
 0xc30   :  { %s937_s13 = scalar_lea.hbm %s1276_s12, 16 }
 0xc31   :  { %p938_p0 = scmp.ne.s32.totalorder %s1276_s12, %s937_s13  ;;  %p941_p1 = scmp.lt.u32.totalorder %s937_s13, %s1276_s12 }
 0xc33   :  { %p943_p2 = pnand %p941_p1, %p938_p0 }
 0xc35   :  { %946 = shalt.err (!%p943_p2)
}
 0xc36   :  { %643 = dma.vmem_to_hbm [thread:$0]  %s641_s17, 16, %s1276_s12, [#allocation5]  }
 0xc37   :  { %947 = dma.done.wait [#allocation5], 16  }
 0xc38   :  { %948 = vsyncadd [#allocation5], 4294967280 }
 0xc39   :  { %949 = dma.done.wait [#allocation7], 16  }
 0xc3a   :  { %950 = vsyncadd [#allocation7], 4294967280 }
 0xc3b   :  { %664 = vsyncpa [#allocation5], 1 }
 0xc3c   :  { %665 = vsyncpa [#allocation7], 1 }

</bundles_post_ra>
